<compile_context>
chip_gen: v5e
topology: v5e:2x2
jax: 0.10.0
libtpu: 0.0.40
codegen_flags: <defaults>
</compile_context>

<pallas_src>
import jax
import jax.numpy as jnp
from jax.experimental import pallas as pl
from jax.experimental.pallas import tpu as pltpu

NEG_SLOPE = 0.01
_TILE_B_MAX = 512                 # rows per batch tile for large batches
_VMEM_LIMIT = 32 * 1024 * 1024    # explicit scoped-VMEM limit (safe on v5e/v6e/v7x)


def _round_up(x, m):
    return ((x + m - 1) // m) * m


def _choose_tile_b(B):
    """Adaptive batch tile: no over-padding for small B; >=2 grid steps when the
    batch allows (v7x has 2 TensorCores); capped at _TILE_B_MAX rows."""
    B = max(int(B), 1)
    if B <= 8:
        tile = 8
    elif B <= 2 * _TILE_B_MAX:
        tile = min(_TILE_B_MAX, _round_up((B + 1) // 2, 8))
    else:
        tile = _TILE_B_MAX
    return tile, _round_up(B, tile)


def _fused_mlp_kernel(x_img_ref, x_mon_ref, w1_ref, w2_ref, b12_ref,
                      w3_ref, b3_ref, out_ref):
    cdt = w1_ref.dtype
    # Hidden layer: both branch Linears accumulate into one f32 buffer whose
    # column layout is already [h_img | h_mon | 0-pad] -> the concat is free.
    h = jnp.dot(x_img_ref[...].astype(cdt), w1_ref[...],
                preferred_element_type=jnp.float32)
    h = h + jnp.dot(x_mon_ref[...].astype(cdt), w2_ref[...],
                    preferred_element_type=jnp.float32)
    h = h + b12_ref[...]                                  # fused (b_img|b_mon|0)
    h = jnp.where(h > 0, h, jnp.float32(NEG_SLOPE) * h)   # LeakyReLU in f32

    # Output layer on the (virtually concatenated, zero-padded) hidden vector.
    out = jnp.dot(h.astype(cdt), w3_ref[...], preferred_element_type=jnp.float32)
    out_ref[...] = (out + b3_ref[...]).astype(out_ref.dtype)


def init_params(key, image_input_size, months_input_size, hidden_size):
    """f32 params mirroring nn.Linear's U(-1/sqrt(fan_in), 1/sqrt(fan_in)),
    stored transposed as (in_features, out_features)."""
    ks = jax.random.split(key, 6)

    def lin(kw, kb, fan_in, fan_out):
        bound = 1.0 / jnp.sqrt(jnp.float32(fan_in))
        w = jax.random.uniform(kw, (fan_in, fan_out), jnp.float32, -bound, bound)
        b = jax.random.uniform(kb, (1, fan_out), jnp.float32, -bound, bound)
        return w, b

    w1, b1 = lin(ks[0], ks[1], image_input_size, hidden_size)
    w2, b2 = lin(ks[2], ks[3], months_input_size, hidden_size)
    w3, b3 = lin(ks[4], ks[5], 2 * hidden_size, image_input_size)
    return {"w1": w1, "b1": b1, "w2": w2, "b2": b2, "w3": w3, "b3": b3}


def prepare_kernel_params(params, image_input_size, months_input_size,
                          compute_dtype=jnp.bfloat16):
    """Pad / fuse / cast the module parameters for the kernel (done once)."""
    I, M = image_input_size, months_input_size
    H = params["w1"].shape[1]
    Hp2 = _round_up(2 * H, 128)   # padded "concat hidden" width (lane-dense)
    Ip = _round_up(I, 128)        # lane-dense output width

    # Branch weights embedded at their slot of the padded concat-hidden axis.
    w1_k = jnp.zeros((I, Hp2), jnp.float32).at[:, :H].set(params["w1"])
    w2_k = jnp.zeros((M, Hp2), jnp.float32).at[:, H:2 * H].set(params["w2"])
    # Fused hidden bias; pad entries MUST stay zero for exactness.
    b12 = (jnp.zeros((1, Hp2), jnp.float32)
           .at[:, :H].set(params["b1"])
           .at[:, H:2 * H].set(params["b2"]))
    w3_k = jnp.zeros((Hp2, Ip), jnp.float32).at[:2 * H, :I].set(params["w3"])
    b3_k = jnp.zeros((1, Ip), jnp.float32).at[:, :I].set(params["b3"])

    return {
        "w1": w1_k.astype(compute_dtype),
        "w2": w2_k.astype(compute_dtype),
        "b12": b12,                       # f32, added post-accumulation
        "w3": w3_k.astype(compute_dtype),
        "b3": b3_k,                       # f32
        "I": I, "M": M, "H": H, "Hp2": Hp2, "Ip": Ip,
    }


def model_forward(image_input, months_input, kparams, out_dtype=jnp.float32):
    B, I = image_input.shape
    Bm, M = months_input.shape
    assert B == Bm
    Hp2, Ip = kparams["Hp2"], kparams["Ip"]

    tile_b, B_pad = _choose_tile_b(B)
    if B_pad != B:   # only pads the (cheap) batch axis; zero for the demo B=8
        image_input = jnp.pad(image_input, ((0, B_pad - B), (0, 0)))
        months_input = jnp.pad(months_input, ((0, B_pad - B), (0, 0)))
    n_b = B_pad // tile_b

    flops = int(2 * B_pad * (I * Hp2 + M * Hp2 + Hp2 * Ip))
    bytes_accessed = int(
        image_input.size * image_input.dtype.itemsize
        + months_input.size * months_input.dtype.itemsize
        + sum(kparams[k].size * kparams[k].dtype.itemsize
              for k in ("w1", "w2", "b12", "w3", "b3"))
        + B_pad * Ip * jnp.dtype(out_dtype).itemsize)

    def build_call(single_buffer_weights):
        def const_spec(shape):
            # Grid-invariant operands: single-buffer to halve their VMEM and
            # avoid redundant second-buffer DMAs.
            if single_buffer_weights:
                return pl.BlockSpec(shape, lambda i: (0, 0),
                                    pipeline_mode=pl.Buffered(1))
            return pl.BlockSpec(shape, lambda i: (0, 0))

        return pl.pallas_call(
            _fused_mlp_kernel,
            out_shape=jax.ShapeDtypeStruct((B_pad, Ip), out_dtype),
            grid_spec=pltpu.PrefetchScalarGridSpec(
                num_scalar_prefetch=0,
                grid=(n_b,),
                in_specs=[
                    pl.BlockSpec((tile_b, I), lambda i: (i, 0)),   # x_img tile
                    pl.BlockSpec((tile_b, M), lambda i: (i, 0)),   # x_mon tile
                    const_spec((I, Hp2)),                          # W1 (padded)
                    const_spec((M, Hp2)),                          # W2 (padded)
                    const_spec((1, Hp2)),                          # fused bias
                    const_spec((Hp2, Ip)),                         # W3 (padded)
                    const_spec((1, Ip)),                           # output bias
                ],
                out_specs=pl.BlockSpec((tile_b, Ip), lambda i: (i, 0)),
            ),
            compiler_params=pltpu.CompilerParams(
                dimension_semantics=("parallel",),
                vmem_limit_bytes=_VMEM_LIMIT),
            cost_estimate=pl.CostEstimate(
                flops=flops, transcendentals=0, bytes_accessed=bytes_accessed),
        )

    args = (image_input, months_input, kparams["w1"], kparams["w2"],
            kparams["b12"], kparams["w3"], kparams["b3"])
    try:
        out_padded = build_call(True)(*args)
    except Exception:
        # Fallback if pipeline_mode=pl.Buffered(1) is unsupported in this build.
        out_padded = build_call(False)(*args)

    return out_padded[:B, :I]


def reference_forward(image_input, months_input, p):
    """Pure-f32 reference mirroring the PyTorch module exactly."""
    lrelu = lambda x: jnp.where(x > 0, x, NEG_SLOPE * x)
    h1 = lrelu(image_input @ p["w1"] + p["b1"])
    h2 = lrelu(months_input @ p["w2"] + p["b2"])
    combined = jnp.concatenate([h1, h2], axis=1)
    return combined @ p["w3"] + p["b3"]


if __name__ == "__main__":
    # Small synthetic shapes consistent with the module's forward.
    batch = 8
    image_input_size = 128
    months_input_size = 8
    hidden_size = 32

    key = jax.random.PRNGKey(0)
    k_img, k_mon, k_param = jax.random.split(key, 3)

    image_input = jax.random.normal(k_img, (batch, image_input_size), jnp.float32)
    months_input = jax.random.normal(k_mon, (batch, months_input_size), jnp.float32)

    params = init_params(k_param, image_input_size, months_input_size, hidden_size)
    kparams = prepare_kernel_params(params, image_input_size, months_input_size)

    out = model_forward(image_input, months_input, kparams)
    out = jax.block_until_ready(out)

    ref = reference_forward(image_input, months_input, params)
    assert out.shape == (batch, image_input_size)
    # bf16 weights / in-kernel bf16 activations with f32 accumulation vs f32 ref.
    max_err = float(jnp.max(jnp.abs(out - ref)))
    assert jnp.allclose(out, ref, atol=5e-2, rtol=5e-2), max_err

    print("KERNEL_OK")
</pallas_src>

<mosaic_0001>
module attributes {stable_mosaic.version = 11 : i64} {
  func.func @_fused_mlp_kernel(%arg0: i32, %arg1: memref<8x128xf32, #tpu.memory_space<vmem>>, %arg2: memref<8x8xf32, #tpu.memory_space<vmem>>, %arg3: memref<128x128xbf16, #tpu.memory_space<vmem>>, %arg4: memref<8x128xbf16, #tpu.memory_space<vmem>>, %arg5: memref<1x128xf32, #tpu.memory_space<vmem>>, %arg6: memref<128x128xbf16, #tpu.memory_space<vmem>>, %arg7: memref<1x128xf32, #tpu.memory_space<vmem>>, %arg8: memref<8x128xf32, #tpu.memory_space<vmem>>) attributes {dimension_semantics = [#tpu.dimension_semantics<parallel>], iteration_bounds = array<i64: 1>, scalar_prefetch = 0 : i64, scratch_operands = 0 : i64, tpu.core_type = #tpu.core_type<tc>, window_params = [{transform_indices = @transform_0, window_bounds = array<i64: 8, 128>}, {transform_indices = @transform_1, window_bounds = array<i64: 8, 8>}, {pipeline_mode = #tpu.pipeline_mode<synchronous>, transform_indices = @transform_2, window_bounds = array<i64: 128, 128>}, {pipeline_mode = #tpu.pipeline_mode<synchronous>, transform_indices = @transform_3, window_bounds = array<i64: 8, 128>}, {pipeline_mode = #tpu.pipeline_mode<synchronous>, transform_indices = @transform_4, window_bounds = array<i64: 1, 128>}, {pipeline_mode = #tpu.pipeline_mode<synchronous>, transform_indices = @transform_5, window_bounds = array<i64: 128, 128>}, {pipeline_mode = #tpu.pipeline_mode<synchronous>, transform_indices = @transform_6, window_bounds = array<i64: 1, 128>}, {transform_indices = @transform_7, window_bounds = array<i64: 8, 128>}]} {
    %c0 = arith.constant 0 : index
    %c0_0 = arith.constant 0 : index
    %0 = vector.load %arg1[%c0, %c0_0] : memref<8x128xf32, #tpu.memory_space<vmem>>, vector<8x128xf32>
    %1 = arith.truncf %0 : vector<8x128xf32> to vector<8x128xbf16>
    %c0_1 = arith.constant 0 : index
    %c0_2 = arith.constant 0 : index
    %2 = vector.load %arg3[%c0_1, %c0_2] : memref<128x128xbf16, #tpu.memory_space<vmem>>, vector<128x128xbf16>
    %cst = arith.constant dense<0.000000e+00> : vector<8x128xf32>
    %3 = tpu.matmul %1, %2, %cst {dimension_numbers = #tpu.dot_dimension_numbers<[1], [0], [0], [1], [0, 0, 1, 1], [], []>} : vector<8x128xbf16>, vector<128x128xbf16>, vector<8x128xf32> -> vector<8x128xf32>
    %c0_3 = arith.constant 0 : index
    %c0_4 = arith.constant 0 : index
    %4 = vector.load %arg2[%c0_3, %c0_4] : memref<8x8xf32, #tpu.memory_space<vmem>>, vector<8x8xf32>
    %5 = arith.truncf %4 : vector<8x8xf32> to vector<8x8xbf16>
    %c0_5 = arith.constant 0 : index
    %c0_6 = arith.constant 0 : index
    %6 = vector.load %arg4[%c0_5, %c0_6] : memref<8x128xbf16, #tpu.memory_space<vmem>>, vector<8x128xbf16>
    %cst_7 = arith.constant dense<0.000000e+00> : vector<8x128xf32>
    %7 = tpu.matmul %5, %6, %cst_7 {dimension_numbers = #tpu.dot_dimension_numbers<[1], [0], [0], [1], [0, 0, 1, 1], [], []>} : vector<8x8xbf16>, vector<8x128xbf16>, vector<8x128xf32> -> vector<8x128xf32>
    %8 = arith.addf %3, %7 : vector<8x128xf32>
    %c0_8 = arith.constant 0 : index
    %c0_9 = arith.constant 0 : index
    %9 = vector.load %arg5[%c0_8, %c0_9] : memref<1x128xf32, #tpu.memory_space<vmem>>, vector<1x128xf32>
    %10 = vector.broadcast %9 : vector<1x128xf32> to vector<8x128xf32>
    %11 = arith.addf %8, %10 : vector<8x128xf32>
    %cst_10 = arith.constant 0.000000e+00 : f32
    %12 = vector.broadcast %cst_10 : f32 to vector<8x128xf32>
    %13 = arith.cmpf ogt, %11, %12 : vector<8x128xf32>
    %cst_11 = arith.constant 0.00999999977 : f32
    %14 = vector.broadcast %cst_11 : f32 to vector<8x128xf32>
    %15 = arith.mulf %14, %11 : vector<8x128xf32>
    %16 = arith.select %13, %11, %15 : vector<8x128xi1>, vector<8x128xf32>
    %17 = arith.truncf %16 : vector<8x128xf32> to vector<8x128xbf16>
    %c0_12 = arith.constant 0 : index
    %c0_13 = arith.constant 0 : index
    %18 = vector.load %arg6[%c0_12, %c0_13] : memref<128x128xbf16, #tpu.memory_space<vmem>>, vector<128x128xbf16>
    %cst_14 = arith.constant dense<0.000000e+00> : vector<8x128xf32>
    %19 = tpu.matmul %17, %18, %cst_14 {dimension_numbers = #tpu.dot_dimension_numbers<[1], [0], [0], [1], [0, 0, 1, 1], [], []>} : vector<8x128xbf16>, vector<128x128xbf16>, vector<8x128xf32> -> vector<8x128xf32>
    %c0_15 = arith.constant 0 : index
    %c0_16 = arith.constant 0 : index
    %20 = vector.load %arg7[%c0_15, %c0_16] : memref<1x128xf32, #tpu.memory_space<vmem>>, vector<1x128xf32>
    %21 = vector.broadcast %20 : vector<1x128xf32> to vector<8x128xf32>
    %22 = arith.addf %19, %21 : vector<8x128xf32>
    %c0_17 = arith.constant 0 : index
    %c0_18 = arith.constant 0 : index
    %23 = vector.load %arg8[%c0_17, %c0_18] : memref<8x128xf32, #tpu.memory_space<vmem>>, vector<8x128xf32>
    tpu.vector_store %arg8[%c0_17, %c0_18], %22 {strides = array<i32>} : memref<8x128xf32, #tpu.memory_space<vmem>>, vector<8x128xf32>,
    return
  }
  func.func @transform_0(%arg0: i32) -> (i32, i32) {
    %c0_i32 = arith.constant 0 : i32
    %c0_i32_0 = arith.constant 0 : i32
    return %arg0, %c0_i32 : i32, i32
  }
  func.func @transform_1(%arg0: i32) -> (i32, i32) {
    %c0_i32 = arith.constant 0 : i32
    %c0_i32_0 = arith.constant 0 : i32
    return %arg0, %c0_i32 : i32, i32
  }
  func.func @transform_2(%arg0: i32) -> (i32, i32) {
    %c0_i32 = arith.constant 0 : i32
    %c0_i32_0 = arith.constant 0 : i32
    %c0_i32_1 = arith.constant 0 : i32
    return %c0_i32, %c0_i32_0 : i32, i32
  }
  func.func @transform_3(%arg0: i32) -> (i32, i32) {
    %c0_i32 = arith.constant 0 : i32
    %c0_i32_0 = arith.constant 0 : i32
    %c0_i32_1 = arith.constant 0 : i32
    return %c0_i32, %c0_i32_0 : i32, i32
  }
  func.func @transform_4(%arg0: i32) -> (i32, i32) {
    %c0_i32 = arith.constant 0 : i32
    %c0_i32_0 = arith.constant 0 : i32
    %c0_i32_1 = arith.constant 0 : i32
    return %c0_i32, %c0_i32_0 : i32, i32
  }
  func.func @transform_5(%arg0: i32) -> (i32, i32) {
    %c0_i32 = arith.constant 0 : i32
    %c0_i32_0 = arith.constant 0 : i32
    %c0_i32_1 = arith.constant 0 : i32
    return %c0_i32, %c0_i32_0 : i32, i32
  }
  func.func @transform_6(%arg0: i32) -> (i32, i32) {
    %c0_i32 = arith.constant 0 : i32
    %c0_i32_0 = arith.constant 0 : i32
    %c0_i32_1 = arith.constant 0 : i32
    return %c0_i32, %c0_i32_0 : i32, i32
  }
  func.func @transform_7(%arg0: i32) -> (i32, i32) {
    %c0_i32 = arith.constant 0 : i32
    %c0_i32_0 = arith.constant 0 : i32
    return %arg0, %c0_i32 : i32, i32
  }
}

module attributes {stable_mosaic.version = 11 : i64} {
  func.func @_fused_mlp_kernel(%arg0: i32, %arg1: memref<8x128xf32, #tpu.memory_space<vmem>>, %arg2: memref<8x8xf32, #tpu.memory_space<vmem>>, %arg3: memref<128x128xbf16, #tpu.memory_space<vmem>>, %arg4: memref<8x128xbf16, #tpu.memory_space<vmem>>, %arg5: memref<1x128xf32, #tpu.memory_space<vmem>>, %arg6: memref<128x128xbf16, #tpu.memory_space<vmem>>, %arg7: memref<1x128xf32, #tpu.memory_space<vmem>>, %arg8: memref<8x128xf32, #tpu.memory_space<vmem>>) attributes {dimension_semantics = [#tpu.dimension_semantics<parallel>], iteration_bounds = array<i64: 1>, scalar_prefetch = 0 : i64, scratch_operands = 0 : i64, tpu.core_type = #tpu.core_type<tc>, window_params = [{transform_indices = @transform_0, window_bounds = array<i64: 8, 128>}, {transform_indices = @transform_1, window_bounds = array<i64: 8, 8>}, {pipeline_mode = #tpu.pipeline_mode<synchronous>, transform_indices = @transform_2, window_bounds = array<i64: 128, 128>}, {pipeline_mode = #tpu.pipeline_mode<synchronous>, transform_indices = @transform_3, window_bounds = array<i64: 8, 128>}, {pipeline_mode = #tpu.pipeline_mode<synchronous>, transform_indices = @transform_4, window_bounds = array<i64: 1, 128>}, {pipeline_mode = #tpu.pipeline_mode<synchronous>, transform_indices = @transform_5, window_bounds = array<i64: 128, 128>}, {pipeline_mode = #tpu.pipeline_mode<synchronous>, transform_indices = @transform_6, window_bounds = array<i64: 1, 128>}, {transform_indices = @transform_7, window_bounds = array<i64: 8, 128>}]} {
    %c0 = arith.constant 0 : index
    %c0_0 = arith.constant 0 : index
    %0 = vector.load %arg1[%c0, %c0_0] : memref<8x128xf32, #tpu.memory_space<vmem>>, vector<8x128xf32>
    %1 = arith.truncf %0 : vector<8x128xf32> to vector<8x128xbf16>
    %c0_1 = arith.constant 0 : index
    %c0_2 = arith.constant 0 : index
    %2 = vector.load %arg3[%c0_1, %c0_2] : memref<128x128xbf16, #tpu.memory_space<vmem>>, vector<128x128xbf16>
    %cst = arith.constant dense<0.000000e+00> : vector<8x128xf32>
    %3 = tpu.matmul %1, %2, %cst {dimension_numbers = #tpu.dot_dimension_numbers<[1], [0], [0], [1], [0, 0, 1, 1], [], []>} : vector<8x128xbf16>, vector<128x128xbf16>, vector<8x128xf32> -> vector<8x128xf32>
    %c0_3 = arith.constant 0 : index
    %c0_4 = arith.constant 0 : index
    %4 = vector.load %arg2[%c0_3, %c0_4] : memref<8x8xf32, #tpu.memory_space<vmem>>, vector<8x8xf32>
    %5 = arith.truncf %4 : vector<8x8xf32> to vector<8x8xbf16>
    %c0_5 = arith.constant 0 : index
    %c0_6 = arith.constant 0 : index
    %6 = vector.load %arg4[%c0_5, %c0_6] : memref<8x128xbf16, #tpu.memory_space<vmem>>, vector<8x128xbf16>
    %cst_7 = arith.constant dense<0.000000e+00> : vector<8x128xf32>
    %7 = tpu.matmul %5, %6, %cst_7 {dimension_numbers = #tpu.dot_dimension_numbers<[1], [0], [0], [1], [0, 0, 1, 1], [], []>} : vector<8x8xbf16>, vector<8x128xbf16>, vector<8x128xf32> -> vector<8x128xf32>
    %8 = arith.addf %3, %7 : vector<8x128xf32>
    %c0_8 = arith.constant 0 : index
    %c0_9 = arith.constant 0 : index
    %9 = vector.load %arg5[%c0_8, %c0_9] : memref<1x128xf32, #tpu.memory_space<vmem>>, vector<1x128xf32>
    %10 = vector.broadcast %9 : vector<1x128xf32> to vector<8x128xf32>
    %11 = arith.addf %8, %10 : vector<8x128xf32>
    %cst_10 = arith.constant 0.000000e+00 : f32
    %12 = vector.broadcast %cst_10 : f32 to vector<8x128xf32>
    %13 = arith.cmpf ogt, %11, %12 : vector<8x128xf32>
    %cst_11 = arith.constant 0.00999999977 : f32
    %14 = vector.broadcast %cst_11 : f32 to vector<8x128xf32>
    %15 = arith.mulf %14, %11 : vector<8x128xf32>
    %16 = arith.select %13, %11, %15 : vector<8x128xi1>, vector<8x128xf32>
    %17 = arith.truncf %16 : vector<8x128xf32> to vector<8x128xbf16>
    %c0_12 = arith.constant 0 : index
    %c0_13 = arith.constant 0 : index
    %18 = vector.load %arg6[%c0_12, %c0_13] : memref<128x128xbf16, #tpu.memory_space<vmem>>, vector<128x128xbf16>
    %cst_14 = arith.constant dense<0.000000e+00> : vector<8x128xf32>
    %19 = tpu.matmul %17, %18, %cst_14 {dimension_numbers = #tpu.dot_dimension_numbers<[1], [0], [0], [1], [0, 0, 1, 1], [], []>} : vector<8x128xbf16>, vector<128x128xbf16>, vector<8x128xf32> -> vector<8x128xf32>
    %c0_15 = arith.constant 0 : index
    %c0_16 = arith.constant 0 : index
    %20 = vector.load %arg7[%c0_15, %c0_16] : memref<1x128xf32, #tpu.memory_space<vmem>>, vector<1x128xf32>
    %21 = vector.broadcast %20 : vector<1x128xf32> to vector<8x128xf32>
    %22 = arith.addf %19, %21 : vector<8x128xf32>
    %c0_17 = arith.constant 0 : index
    %c0_18 = arith.constant 0 : index
    %23 = vector.load %arg8[%c0_17, %c0_18] : memref<8x128xf32, #tpu.memory_space<vmem>>, vector<8x128xf32>
    tpu.vector_store %arg8[%c0_17, %c0_18], %22 {strides = array<i32>} : memref<8x128xf32, #tpu.memory_space<vmem>>, vector<8x128xf32>,
    return
  }
  func.func @transform_0(%arg0: i32) -> (i32, i32) {
    %c0_i32 = arith.constant 0 : i32
    %c0_i32_0 = arith.constant 0 : i32
    return %arg0, %c0_i32 : i32, i32
  }
  func.func @transform_1(%arg0: i32) -> (i32, i32) {
    %c0_i32 = arith.constant 0 : i32
    %c0_i32_0 = arith.constant 0 : i32
    return %arg0, %c0_i32 : i32, i32
  }
  func.func @transform_2(%arg0: i32) -> (i32, i32) {
    %c0_i32 = arith.constant 0 : i32
    %c0_i32_0 = arith.constant 0 : i32
    %c0_i32_1 = arith.constant 0 : i32
    return %c0_i32, %c0_i32_0 : i32, i32
  }
  func.func @transform_3(%arg0: i32) -> (i32, i32) {
    %c0_i32 = arith.constant 0 : i32
    %c0_i32_0 = arith.constant 0 : i32
    %c0_i32_1 = arith.constant 0 : i32
    return %c0_i32, %c0_i32_0 : i32, i32
  }
  func.func @transform_4(%arg0: i32) -> (i32, i32) {
    %c0_i32 = arith.constant 0 : i32
    %c0_i32_0 = arith.constant 0 : i32
    %c0_i32_1 = arith.constant 0 : i32
    return %c0_i32, %c0_i32_0 : i32, i32
  }
  func.func @transform_5(%arg0: i32) -> (i32, i32) {
    %c0_i32 = arith.constant 0 : i32
    %c0_i32_0 = arith.constant 0 : i32
    %c0_i32_1 = arith.constant 0 : i32
    return %c0_i32, %c0_i32_0 : i32, i32
  }
  func.func @transform_6(%arg0: i32) -> (i32, i32) {
    %c0_i32 = arith.constant 0 : i32
    %c0_i32_0 = arith.constant 0 : i32
    %c0_i32_1 = arith.constant 0 : i32
    return %c0_i32, %c0_i32_0 : i32, i32
  }
  func.func @transform_7(%arg0: i32) -> (i32, i32) {
    %c0_i32 = arith.constant 0 : i32
    %c0_i32_0 = arith.constant 0 : i32
    return %arg0, %c0_i32 : i32, i32
  }
}

</mosaic_0001>

<bundles_post_ra>
// kernel: tpu_custom_call.1
= control target key start
LH: loop header
LB: loop body
LE: loop exit
PB: predicated region body
PF: predicated region fallthrough
CT: control target
= control target key end

     0   :  { %12 = vsyncpa [#allocation3], 0  ;;  %s628_s0 = inlined_call_operand.hbm [shape: f32[8,128], index: 0, kind: input, shape index: {}]   ;;  %s629_s1 = inlined_call_operand.hbm [shape: f32[8,8], index: 1, kind: input, shape index: {}]   ;;  %s630_s2 = inlined_call_operand.hbm [shape: bf16[128,128], index: 2, kind: input, shape index: {}]   ;;  %s631_s3 = inlined_call_operand.hbm [shape: bf16[8,128], index: 3, kind: input, shape index: {}]   ;;  %s632_s4 = inlined_call_operand.vmem [shape: f32[1,128], index: 4, kind: input, shape index: {}]   ;;  %s633_s5 = inlined_call_operand.hbm [shape: bf16[128,128], index: 5, kind: input, shape index: {}]   ;;  %s634_s6 = inlined_call_operand.vmem [shape: f32[1,128], index: 6, kind: input, shape index: {}]   ;;  %s635_s7 = inlined_call_operand.hbm [shape: f32[8,128], index: 7, kind: output, shape index: {}]  }
   0x1   :  { %13 = vsyncpa [#allocation6], 0 }
   0x2   :  { %14 = vsyncpa [#allocation9], 0  ;;  %s32_s26 = sshll.u32 %s629_s1, 4  ;;  %s33_s26 = int_to_ptr.hbm [resolvable:$true] %s32_s26 }
   0x3   :  { %15 = vsyncpa [#allocation4], 0  ;;  %s556_s27 = smov [#allocation5]   ;;  %s56_s8 = sshll.u32 %s631_s3, 4  ;;  %s57_s8 = int_to_ptr.hbm [resolvable:$true] %s56_s8 }
   0x4   :  { %s34_s28 = sshll.u32 %s556_s27, 4  ;;  %s557_s9 = smov [#allocation8]   ;;  %s35_s28 = int_to_ptr.vmem [resolvable:$true] %s34_s28 }
   0x5   :  { %37 = dma.hbm_to_vmem [thread:$0]  %s33_s26, 128, %s35_s28, [#allocation6]  }
   0x6   :  { %s58_s10 = sshll.u32 %s557_s9, 4  ;;  %s21_s13 = sshll.u32 %s628_s0, 4  ;;  %s59_s10 = int_to_ptr.vmem [resolvable:$true] %s58_s10  ;;  %s22_s13 = int_to_ptr.hbm [resolvable:$true] %s21_s13 }
   0x7   :  { %61 = dma.hbm_to_vmem [thread:$0]  %s57_s8, 64, %s59_s10, [#allocation9]  }
   0x8   :  { %s42_s15 = sshll.u32 %s630_s2, 4  ;;  %s558_s16 = smov [#allocation2]   ;;  %s43_s15 = int_to_ptr.hbm [resolvable:$true] %s42_s15 }
   0x9   :  { %s23_s17 = sshll.u32 %s558_s16, 4  ;;  %s559_s3 = smov [#allocation7]   ;;  %s24_s17 = int_to_ptr.vmem [resolvable:$true] %s23_s17 }
   0xa   :  { %26 = dma.hbm_to_vmem [thread:$0]  %s22_s13, 128, %s24_s17, [#allocation3]  }
   0xb   :  { %s44_s18 = sshll.u32 %s559_s3, 4  ;;  %s560_s19 = smov 64   ;;  %s45_s18 = int_to_ptr.vmem [resolvable:$true] %s44_s18 }
   0xc   :  { %s561_s20 = smov 4   ;;  %s68_s22 = sshll.u32 %s633_s5, 4  ;;  %s69_s22 = int_to_ptr.hbm [resolvable:$true] %s68_s22 }
   0xd   :  { %50 = dma.hbm_to_vmem [thread:$0]  %s43_s15, 1024, %s45_s18, [#allocation6], %s560_s19, %s560_s19, %s561_s20  }
   0xe   :  { %s562_s23 = smov [#allocation10]  }
   0xf   :  { %s70_s24 = sshll.u32 %s562_s23, 4  ;;  %s71_s24 = int_to_ptr.vmem [resolvable:$true] %s70_s24 }
  0x10   :  { %76 = dma.hbm_to_vmem [thread:$0]  %s69_s22, 1024, %s71_s24, [#allocation9], %s560_s19, %s560_s19, %s561_s20  }
  0x11   :  { %548 = dma.done.wait [#allocation3], 128  }
  0x12   :  { %549 = vsyncadd [#allocation3], 4294967168 }
  0x13   :  { %550 = dma.done.wait [#allocation6], 1152  }
  0x14   :  { %551 = vsyncadd [#allocation6], 4294966144 }
  0x15   :  { %552 = dma.done.wait [#allocation9], 1088  }
  0x16   :  { %553 = vsyncadd [#allocation9], 4294966208  ;;  %vm125_vm0 = vcmask 1043456   ;;  %v385_v0 = vld [vmem:[#allocation7 + $0x38] sm:$0xff]  ;;  %v120_v1 = vld [vmem:[#allocation8] sm:$0xf] }
  0x17   :  { %190 = vmatpush.bf16.msra.mxu1 %v385_v0  ;;  %v384_v2 = vld [vmem:[#allocation7 + $0x30] sm:$0xff]  ;;  %v127_v3 = vsel %vm125_vm0, %v120_v1, 0  ;;  %v118_v4 = vld [vmem:[#allocation5] sm:$0xff]  ;;  %vm121_vm1 = vcmask 64512   ;;  %v383_v8 = vld [vmem:[#allocation7 + $0x28] sm:$0xff]  ;;  %s563_s27 = smov [#allocation11]  }
  0x18   :  { %136 = vmatpush.bf16.msra.mxu0 %v127_v3  ;;  %v119_v5 = vpack.c.bf16 %v118_v4, %v118_v4  ;;  %v393_v6 = vld [vmem:[#allocation10 + $0x38] sm:$0xff]  ;;  %v392_v7 = vld [vmem:[#allocation10 + $0x30] sm:$0xff]  ;;  %v391_v9 = vld [vmem:[#allocation10 + $0x28] sm:$0xff]  ;;  %s299_s28 = sshll.u32 %s563_s27, 4  ;;  %s301_s8 = sshll.u32 %s635_s7, 4  ;;  %s300_s28 = int_to_ptr.vmem [resolvable:$true] %s299_s28  ;;  %s302_s8 = int_to_ptr.hbm [resolvable:$true] %s301_s8 }
  0x19   :  { %280 = vmatpush.bf16.msra.mxu2 %v393_v6  ;;  %v382_v10 = vld [vmem:[#allocation7 + $0x20] sm:$0xff]  ;;  %v381_v12 = vld [vmem:[#allocation7 + $0x18] sm:$0xff]  ;;  %v380_v13 = vld [vmem:[#allocation7 + $0x10] sm:$0xff] }
  0x1a   :  { %v390_v11 = vld [vmem:[#allocation10 + $0x20] sm:$0xff]  ;;  %v100_v16 = vld [vmem:[#allocation2] sm:$0xff]  ;;  %v389_v18 = vld [vmem:[#allocation10 + $0x18] sm:$0xff] }
  0x1b   :  { %191 = vmatpush.bf16.msra.mxu1 %v384_v2  ;;  %313 = vmatmul.msk.bf16.vlgmr.msra.gmra.mxu0 %vm121_vm1, %v119_v5  ;;  %v379_v14 = vld [vmem:[#allocation7 + $0x8] sm:$0xff]  ;;  %v378_v15 = vld [vmem:[#allocation7] sm:$0xff]  ;;  %v101_v17 = vpack.c.bf16 %v100_v16, %v100_v16  ;;  %v388_v19 = vld [vmem:[#allocation10 + $0x10] sm:$0xff] }
  0x1c   :  { %v387_v20 = vld [vmem:[#allocation10 + $0x8] sm:$0xff]  ;;  %v386_v21 = vld [vmem:[#allocation10] sm:$0xff] }
  0x1d   :  { %281 = vmatpush.bf16.msra.mxu2 %v392_v7  ;;  %v402_v24 = vld [vmem:[%s632_s4] ss:$0 sm:$0xff] }
  0x1e   :  { %v403_v32 = vld [vmem:[%s634_s6] ss:$0 sm:$0xff] }
  0x1f   :  { %192 = vmatpush.bf16.msra.mxu1 %v383_v8 }
  0x21   :  { %282 = vmatpush.bf16.msra.mxu2 %v391_v9 }
  0x23   :  { %193 = vmatpush.bf16.msra.mxu1 %v382_v10 }
  0x25   :  { %283 = vmatpush.bf16.msra.mxu2 %v390_v11 }
  0x27   :  { %194 = vmatpush.bf16.msra.mxu1 %v381_v12 }
  0x29   :  { %284 = vmatpush.bf16.msra.mxu2 %v389_v18 }
  0x2b   :  { %195 = vmatpush.bf16.msra.mxu1 %v380_v13 }
  0x2d   :  { %285 = vmatpush.bf16.msra.mxu2 %v388_v19 }
  0x2f   :  { %196 = vmatpush.bf16.msra.mxu1 %v379_v14 }
  0x31   :  { %286 = vmatpush.bf16.msra.mxu2 %v387_v20 }
  0x33   :  { %197 = vmatpush.bf16.msra.mxu1 %v378_v15 }
  0x35   :  { %287 = vmatpush.bf16.msra.mxu2 %v386_v21 }
  0x36   :  { %198 = vmatmul.bf16.vlgmr.msra.gmra.mxu1 %v101_v17 }
  0x98   :  { %v138_v22 = vpop.f32.mrf.mxu0 }
  0xa0   :  { %v140_v23 = vpop.f32.mrf.mxu0 }
  0xb3   :  { %v199_v25 = vpop.f32.mrf.mxu1 }
  0xb4   :  { %v200_v26 = vadd.f32 %v199_v25, %v138_v22 }
  0xb6   :  { %v207_v27 = vadd.f32 %v402_v24, %v200_v26 }
  0xb8   :  { %vm208_vm2 = vcmp.gt.f32.partialorder %v207_v27, 0.0  ;;  %v209_v28 = vmul.f32 0.01, %v207_v27 }
  0xba   :  { %v210_v29 = vsel %vm208_vm2, %v207_v27, %v209_v28 }
  0xbb   :  { %v201_v30 = vpop.f32.mrf.mxu1  ;;  %v211_v31 = vpack.c.bf16 %v210_v29, %v210_v29 }
  0xbd   :  { %288 = vmatmul.bf16.vlgmr.msra.gmra.mxu2 %v211_v31 }
 0x140   :  { %v289_v33 = vpop.f32.mrf.mxu2 }
 0x141   :  { %v290_v34 = vadd.f32 %v403_v32, %v289_v33 }
 0x143   :  { %293 = vst [vmem:[#allocation11] sm:$0xff] %v290_v34 }
 0x144   :  { %304 = dma.vmem_to_hbm [thread:$0]  %s300_s28, 128, %s302_s8, [#allocation4]  }
 0x148   :  { %v291_v35 = vpop.f32.mrf.mxu2 }
 0x149   :  { %554 = dma.done.wait [#allocation4], 128  }
 0x14a   :  { %555 = vsyncadd [#allocation4], 4294967168 }
 0x14b   :  { %309 = vsyncpa [#allocation3], 1 }
 0x14c   :  { %310 = vsyncpa [#allocation6], 1 }
 0x14d   :  { %311 = vsyncpa [#allocation9], 1 }
 0x14e   :  { %312 = vsyncpa [#allocation4], 1 }

// kernel: tpu_custom_call.1
= control target key start
LH: loop header
LB: loop body
LE: loop exit
PB: predicated region body
PF: predicated region fallthrough
CT: control target
= control target key end

     0   :  { %12 = vsyncpa [#allocation3], 0  ;;  %s628_s0 = inlined_call_operand.hbm [shape: f32[8,128], index: 0, kind: input, shape index: {}]   ;;  %s629_s1 = inlined_call_operand.hbm [shape: f32[8,8], index: 1, kind: input, shape index: {}]   ;;  %s630_s2 = inlined_call_operand.hbm [shape: bf16[128,128], index: 2, kind: input, shape index: {}]   ;;  %s631_s3 = inlined_call_operand.hbm [shape: bf16[8,128], index: 3, kind: input, shape index: {}]   ;;  %s632_s4 = inlined_call_operand.vmem [shape: f32[1,128], index: 4, kind: input, shape index: {}]   ;;  %s633_s5 = inlined_call_operand.hbm [shape: bf16[128,128], index: 5, kind: input, shape index: {}]   ;;  %s634_s6 = inlined_call_operand.vmem [shape: f32[1,128], index: 6, kind: input, shape index: {}]   ;;  %s635_s7 = inlined_call_operand.hbm [shape: f32[8,128], index: 7, kind: output, shape index: {}]  }
   0x1   :  { %13 = vsyncpa [#allocation6], 0 }
   0x2   :  { %14 = vsyncpa [#allocation9], 0  ;;  %s32_s26 = sshll.u32 %s629_s1, 4  ;;  %s33_s26 = int_to_ptr.hbm [resolvable:$true] %s32_s26 }
   0x3   :  { %15 = vsyncpa [#allocation4], 0  ;;  %s556_s27 = smov [#allocation5]   ;;  %s56_s8 = sshll.u32 %s631_s3, 4  ;;  %s57_s8 = int_to_ptr.hbm [resolvable:$true] %s56_s8 }
   0x4   :  { %s34_s28 = sshll.u32 %s556_s27, 4  ;;  %s557_s9 = smov [#allocation8]   ;;  %s35_s28 = int_to_ptr.vmem [resolvable:$true] %s34_s28 }
   0x5   :  { %37 = dma.hbm_to_vmem [thread:$0]  %s33_s26, 128, %s35_s28, [#allocation6]  }
   0x6   :  { %s58_s10 = sshll.u32 %s557_s9, 4  ;;  %s21_s13 = sshll.u32 %s628_s0, 4  ;;  %s59_s10 = int_to_ptr.vmem [resolvable:$true] %s58_s10  ;;  %s22_s13 = int_to_ptr.hbm [resolvable:$true] %s21_s13 }
   0x7   :  { %61 = dma.hbm_to_vmem [thread:$0]  %s57_s8, 64, %s59_s10, [#allocation9]  }
   0x8   :  { %s42_s15 = sshll.u32 %s630_s2, 4  ;;  %s558_s16 = smov [#allocation2]   ;;  %s43_s15 = int_to_ptr.hbm [resolvable:$true] %s42_s15 }
   0x9   :  { %s23_s17 = sshll.u32 %s558_s16, 4  ;;  %s559_s3 = smov [#allocation7]   ;;  %s24_s17 = int_to_ptr.vmem [resolvable:$true] %s23_s17 }
   0xa   :  { %26 = dma.hbm_to_vmem [thread:$0]  %s22_s13, 128, %s24_s17, [#allocation3]  }
   0xb   :  { %s44_s18 = sshll.u32 %s559_s3, 4  ;;  %s560_s19 = smov 64   ;;  %s45_s18 = int_to_ptr.vmem [resolvable:$true] %s44_s18 }
   0xc   :  { %s561_s20 = smov 4   ;;  %s68_s22 = sshll.u32 %s633_s5, 4  ;;  %s69_s22 = int_to_ptr.hbm [resolvable:$true] %s68_s22 }
   0xd   :  { %50 = dma.hbm_to_vmem [thread:$0]  %s43_s15, 1024, %s45_s18, [#allocation6], %s560_s19, %s560_s19, %s561_s20  }
   0xe   :  { %s562_s23 = smov [#allocation10]  }
   0xf   :  { %s70_s24 = sshll.u32 %s562_s23, 4  ;;  %s71_s24 = int_to_ptr.vmem [resolvable:$true] %s70_s24 }
  0x10   :  { %76 = dma.hbm_to_vmem [thread:$0]  %s69_s22, 1024, %s71_s24, [#allocation9], %s560_s19, %s560_s19, %s561_s20  }
  0x11   :  { %548 = dma.done.wait [#allocation3], 128  }
  0x12   :  { %549 = vsyncadd [#allocation3], 4294967168 }
  0x13   :  { %550 = dma.done.wait [#allocation6], 1152  }
  0x14   :  { %551 = vsyncadd [#allocation6], 4294966144 }
  0x15   :  { %552 = dma.done.wait [#allocation9], 1088  }
  0x16   :  { %553 = vsyncadd [#allocation9], 4294966208  ;;  %vm125_vm0 = vcmask 1043456   ;;  %v385_v0 = vld [vmem:[#allocation7 + $0x38] sm:$0xff]  ;;  %v120_v1 = vld [vmem:[#allocation8] sm:$0xf] }
  0x17   :  { %190 = vmatpush.bf16.msra.mxu1 %v385_v0  ;;  %v384_v2 = vld [vmem:[#allocation7 + $0x30] sm:$0xff]  ;;  %v127_v3 = vsel %vm125_vm0, %v120_v1, 0  ;;  %v118_v4 = vld [vmem:[#allocation5] sm:$0xff]  ;;  %vm121_vm1 = vcmask 64512   ;;  %v383_v8 = vld [vmem:[#allocation7 + $0x28] sm:$0xff]  ;;  %s563_s27 = smov [#allocation11]  }
  0x18   :  { %136 = vmatpush.bf16.msra.mxu0 %v127_v3  ;;  %v119_v5 = vpack.c.bf16 %v118_v4, %v118_v4  ;;  %v393_v6 = vld [vmem:[#allocation10 + $0x38] sm:$0xff]  ;;  %v392_v7 = vld [vmem:[#allocation10 + $0x30] sm:$0xff]  ;;  %v391_v9 = vld [vmem:[#allocation10 + $0x28] sm:$0xff]  ;;  %s299_s28 = sshll.u32 %s563_s27, 4  ;;  %s301_s8 = sshll.u32 %s635_s7, 4  ;;  %s300_s28 = int_to_ptr.vmem [resolvable:$true] %s299_s28  ;;  %s302_s8 = int_to_ptr.hbm [resolvable:$true] %s301_s8 }
  0x19   :  { %280 = vmatpush.bf16.msra.mxu2 %v393_v6  ;;  %v382_v10 = vld [vmem:[#allocation7 + $0x20] sm:$0xff]  ;;  %v381_v12 = vld [vmem:[#allocation7 + $0x18] sm:$0xff]  ;;  %v380_v13 = vld [vmem:[#allocation7 + $0x10] sm:$0xff] }
  0x1a   :  { %v390_v11 = vld [vmem:[#allocation10 + $0x20] sm:$0xff]  ;;  %v100_v16 = vld [vmem:[#allocation2] sm:$0xff]  ;;  %v389_v18 = vld [vmem:[#allocation10 + $0x18] sm:$0xff] }
  0x1b   :  { %191 = vmatpush.bf16.msra.mxu1 %v384_v2  ;;  %313 = vmatmul.msk.bf16.vlgmr.msra.gmra.mxu0 %vm121_vm1, %v119_v5  ;;  %v379_v14 = vld [vmem:[#allocation7 + $0x8] sm:$0xff]  ;;  %v378_v15 = vld [vmem:[#allocation7] sm:$0xff]  ;;  %v101_v17 = vpack.c.bf16 %v100_v16, %v100_v16  ;;  %v388_v19 = vld [vmem:[#allocation10 + $0x10] sm:$0xff] }
  0x1c   :  { %v387_v20 = vld [vmem:[#allocation10 + $0x8] sm:$0xff]  ;;  %v386_v21 = vld [vmem:[#allocation10] sm:$0xff] }
  0x1d   :  { %281 = vmatpush.bf16.msra.mxu2 %v392_v7  ;;  %v402_v24 = vld [vmem:[%s632_s4] ss:$0 sm:$0xff] }
  0x1e   :  { %v403_v32 = vld [vmem:[%s634_s6] ss:$0 sm:$0xff] }
  0x1f   :  { %192 = vmatpush.bf16.msra.mxu1 %v383_v8 }
  0x21   :  { %282 = vmatpush.bf16.msra.mxu2 %v391_v9 }
  0x23   :  { %193 = vmatpush.bf16.msra.mxu1 %v382_v10 }
  0x25   :  { %283 = vmatpush.bf16.msra.mxu2 %v390_v11 }
  0x27   :  { %194 = vmatpush.bf16.msra.mxu1 %v381_v12 }
  0x29   :  { %284 = vmatpush.bf16.msra.mxu2 %v389_v18 }
  0x2b   :  { %195 = vmatpush.bf16.msra.mxu1 %v380_v13 }
  0x2d   :  { %285 = vmatpush.bf16.msra.mxu2 %v388_v19 }
  0x2f   :  { %196 = vmatpush.bf16.msra.mxu1 %v379_v14 }
  0x31   :  { %286 = vmatpush.bf16.msra.mxu2 %v387_v20 }
  0x33   :  { %197 = vmatpush.bf16.msra.mxu1 %v378_v15 }
  0x35   :  { %287 = vmatpush.bf16.msra.mxu2 %v386_v21 }
  0x36   :  { %198 = vmatmul.bf16.vlgmr.msra.gmra.mxu1 %v101_v17 }
  0x98   :  { %v138_v22 = vpop.f32.mrf.mxu0 }
  0xa0   :  { %v140_v23 = vpop.f32.mrf.mxu0 }
  0xb3   :  { %v199_v25 = vpop.f32.mrf.mxu1 }
  0xb4   :  { %v200_v26 = vadd.f32 %v199_v25, %v138_v22 }
  0xb6   :  { %v207_v27 = vadd.f32 %v402_v24, %v200_v26 }
  0xb8   :  { %vm208_vm2 = vcmp.gt.f32.partialorder %v207_v27, 0.0  ;;  %v209_v28 = vmul.f32 0.01, %v207_v27 }
  0xba   :  { %v210_v29 = vsel %vm208_vm2, %v207_v27, %v209_v28 }
  0xbb   :  { %v201_v30 = vpop.f32.mrf.mxu1  ;;  %v211_v31 = vpack.c.bf16 %v210_v29, %v210_v29 }
  0xbd   :  { %288 = vmatmul.bf16.vlgmr.msra.gmra.mxu2 %v211_v31 }
 0x140   :  { %v289_v33 = vpop.f32.mrf.mxu2 }
 0x141   :  { %v290_v34 = vadd.f32 %v403_v32, %v289_v33 }
 0x143   :  { %293 = vst [vmem:[#allocation11] sm:$0xff] %v290_v34 }
 0x144   :  { %304 = dma.vmem_to_hbm [thread:$0]  %s300_s28, 128, %s302_s8, [#allocation4]  }
 0x148   :  { %v291_v35 = vpop.f32.mrf.mxu2 }
 0x149   :  { %554 = dma.done.wait [#allocation4], 128  }
 0x14a   :  { %555 = vsyncadd [#allocation4], 4294967168 }
 0x14b   :  { %309 = vsyncpa [#allocation3], 1 }
 0x14c   :  { %310 = vsyncpa [#allocation6], 1 }
 0x14d   :  { %311 = vsyncpa [#allocation9], 1 }
 0x14e   :  { %312 = vsyncpa [#allocation4], 1 }

</bundles_post_ra>
